<compile_context>
chip_gen: v5e
topology: v5e:2x2
jax: 0.10.0
libtpu: 0.0.40
codegen_flags: <defaults>
</compile_context>

<pallas_src>
import functools

import jax
import jax.numpy as jnp
from jax.experimental import pallas as pl
from jax.experimental.pallas import tpu as pltpu


def _mlp_kernel(num_layers, x_ref, *refs):
    """refs = (w0, b0, w1, b1, ..., w_{L-1}, b_{L-1}, out_ref).

    x_ref : [d_in, batch_tile]   (io_dtype)
    w_i   : [out_i, in_i]        (io_dtype)
    b_i   : [out_i, 1]           (f32)
    out   : [d_out, batch_tile]  (io_dtype)
    """
    out_ref = refs[-1]
    h = x_ref[...]                                   # lane-dense over batch
    for i in range(num_layers):
        w = refs[2 * i][...]
        b = refs[2 * i + 1][...]                     # f32, broadcasts over lanes
        # TODO(synk): for very skinny layers (in/out <= 4) an unrolled VPU FMA path
        # could skip the MXU round trip; keep jnp.dot until measured.
        acc = jnp.dot(w, h, preferred_element_type=jnp.float32) + b
        if i < num_layers - 1:
            # f32 tanh on the EUP, then back to the weight dtype so the next
            # matmul stays on the MXU's native (e.g. bf16) path.
            h = jnp.tanh(acc).astype(w.dtype)
        else:
            h = acc
    out_ref[...] = h.astype(out_ref.dtype)


def _vmem_capacity_bytes():
    try:
        return int(pltpu.get_tpu_info().vmem_capacity_bytes)
    except Exception:
        return 128 * 1024 * 1024                     # v5e/v6e default


def _param_spec(shape, single_buffer):
    index_map = lambda i: (0,) * len(shape)          # resident block: never changes
    if single_buffer:
        try:
            return pl.BlockSpec(shape, index_map, pipeline_mode=pl.Buffered(1))
        except TypeError:                            # jax without pipeline_mode kwarg
            pass
    return pl.BlockSpec(shape, index_map)


def dnn_forward(x, weights, biases, *, batch_tile=None, io_dtype=None):
    """Run the fused MLP Pallas kernel.

    x:       [B, d_in]
    weights: list of [out_i, in_i] arrays   (PyTorch Linear layout)
    biases:  list of [out_i] arrays
    Returns [B, d_out] in io_dtype (default: x.dtype).
    Note: on v5e (lowest HBM BW, no fast f32 MXU path) prefer io_dtype=jnp.bfloat16.
    """
    num_layers = len(weights)
    B, d_in = x.shape
    d_out = weights[-1].shape[0]
    if io_dtype is None:
        io_dtype = x.dtype
    io_bytes = jnp.dtype(io_dtype).itemsize

    # ---- VMEM budget & chip-aware knobs -------------------------------------
    vmem_capacity = _vmem_capacity_bytes()
    vmem_budget = min((vmem_capacity * 3) // 4, 96 * 1024 * 1024)   # ≈48 MiB on v7x
    # v7x (64 MiB VMEM) has 2 TensorCores sharing 'parallel' axes: keep >= 2 steps.
    min_grid = 2 if vmem_capacity <= 64 * 1024 * 1024 else 1

    w_bytes = (sum(int(w.size) for w in weights) * io_bytes
               + sum(int(b.size) for b in biases) * 4)
    single_buffer_params = w_bytes > (1 << 20)       # only worth it for big params
    param_bytes = (1 if single_buffer_params else 2) * w_bytes

    max_width = max(int(w.shape[0]) for w in weights)
    # per-batch-column VMEM: double-buffered x & out blocks + f32 hidden activation
    col_bytes = 2 * (d_in + d_out) * io_bytes + 4 * max_width

    # ---- batch tiling: lanes carry the batch, tiles are multiples of 128 ----
    b_round = 128 * pl.cdiv(B, 128)
    if batch_tile is None:
        avail = max(vmem_budget - param_bytes - (2 << 20), 128 * col_bytes)
        batch_tile = max(128, 128 * ((avail // col_bytes) // 128))
        batch_tile = min(batch_tile, b_round)        # grid=1 for small problems
        if min_grid > 1 and b_round >= min_grid * 128:
            batch_tile = min(batch_tile,
                             max(128, 128 * ((b_round // min_grid) // 128)))
    else:
        batch_tile = max(128, 128 * (batch_tile // 128))
        batch_tile = min(batch_tile, b_round)
    B_pad = batch_tile * pl.cdiv(B, batch_tile)
    grid = (B_pad // batch_tile,)

    # ---- wrapper-side layout prep (pad ragged batch, transpose once, cast) ----
    # TODO(synk): at large B/d fuse these transposes/casts into neighboring XLA ops
    # (or accept [B, d] blocks and transpose in-kernel) to avoid extra HBM traffic.
    if B_pad != B:
        x = jnp.pad(x, ((0, B_pad - B), (0, 0)))
    xt = x.T.astype(io_dtype)                                     # [d_in, B_pad]
    ws = [w.astype(io_dtype) for w in weights]                    # [out_i, in_i]
    bs = [b.reshape(-1, 1).astype(jnp.float32) for b in biases]   # [out_i, 1]

    # ---- specs: x/out tiled over batch lanes, params resident ----
    in_specs = [pl.BlockSpec((d_in, batch_tile), lambda i: (0, i))]
    operands = [xt]
    for w, b in zip(ws, bs):
        in_specs.append(_param_spec(w.shape, single_buffer_params))
        in_specs.append(_param_spec(b.shape, single_buffer_params))
        operands.append(w)
        operands.append(b)
    out_spec = pl.BlockSpec((d_out, batch_tile), lambda i: (0, i))

    # ---- cost estimate (helps XLA schedule around the custom call) ----
    flops = 2 * B_pad * sum(int(w.shape[0]) * int(w.shape[1]) for w in ws)
    transcendentals = B_pad * sum(int(w.shape[0]) for w in ws[:-1])
    bytes_accessed = (B_pad * (d_in + d_out) * io_bytes
                      + sum(int(w.size) for w in ws) * io_bytes
                      + sum(int(b.size) for b in bs) * 4)
    cost = pl.CostEstimate(flops=flops, transcendentals=transcendentals,
                           bytes_accessed=bytes_accessed)

    # ---- VMEM sizing: raise the scoped limit only when big tiles need it ----
    act_bytes = batch_tile * (d_in + d_out) * io_bytes            # x + out blocks
    hid_bytes = batch_tile * max_width * 4                        # f32 hidden
    vmem_est = 2 * act_bytes + param_bytes + hid_bytes
    compiler_kwargs = dict(dimension_semantics=("parallel",))
    if vmem_est > 16 * 1024 * 1024:
        compiler_kwargs["vmem_limit_bytes"] = int(
            min(max((vmem_est * 5) // 4, 16 * 1024 * 1024), vmem_budget))

    kernel = functools.partial(_mlp_kernel, num_layers)
    out_t = pl.pallas_call(
        kernel,
        out_shape=jax.ShapeDtypeStruct((d_out, B_pad), io_dtype),
        grid_spec=pltpu.PrefetchScalarGridSpec(
            num_scalar_prefetch=0,
            grid=grid,
            in_specs=in_specs,
            out_specs=out_spec,
        ),
        compiler_params=pltpu.CompilerParams(**compiler_kwargs),
        cost_estimate=cost,
    )(*operands)

    return out_t.T[:B]                                            # back to [B, d_out]


def init_dnn_params(key, layers):
    """Xavier-normal weights ([out, in], same as torch), zero biases."""
    weights, biases = [], []
    for i in range(len(layers) - 1):
        fan_in, fan_out = layers[i], layers[i + 1]
        key, sub = jax.random.split(key)
        std = (2.0 / (fan_in + fan_out)) ** 0.5
        weights.append(std * jax.random.normal(sub, (fan_out, fan_in), dtype=jnp.float32))
        biases.append(jnp.zeros((fan_out,), dtype=jnp.float32))
    return weights, biases


def dnn_reference(x, weights, biases):
    h = x
    for i, (w, b) in enumerate(zip(weights, biases)):
        h = h @ w.T + b
        if i < len(weights) - 1:
            h = jnp.tanh(h)
    return h


if __name__ == "__main__":
    # DNN(layers=[4, 32, 32, 2]): Linear(4,32)-Tanh-Linear(32,32)-Tanh-Linear(32,2)
    layers = [4, 32, 32, 2]
    batch = 1000  # ragged on purpose: exercises the padding path

    key = jax.random.PRNGKey(0)
    key, xkey = jax.random.split(key)
    x = jax.random.normal(xkey, (batch, layers[0]), dtype=jnp.float32)
    weights, biases = init_dnn_params(key, layers)

    # f32 I/O path (batch_tile auto-derived from VMEM budget -> grid=1 here)
    out = jax.block_until_ready(dnn_forward(x, weights, biases))
    ref = dnn_reference(x, weights, biases)
    assert out.shape == (batch, layers[-1])
    assert jnp.allclose(out, ref, atol=1e-4, rtol=1e-4), "f32 mismatch vs reference"

    # bf16 I/O path (halves HBM traffic; f32 accumulation + f32 tanh inside)
    out_bf16 = jax.block_until_ready(
        dnn_forward(x, weights, biases, io_dtype=jnp.bfloat16))
    ref_bf16 = dnn_reference(
        x.astype(jnp.bfloat16).astype(jnp.float32),
        [w.astype(jnp.bfloat16).astype(jnp.float32) for w in weights],
        biases,
    ).astype(jnp.bfloat16)
    assert out_bf16.shape == (batch, layers[-1])
    assert jnp.allclose(out_bf16.astype(jnp.float32), ref_bf16.astype(jnp.float32),
                        atol=3e-2, rtol=3e-2), "bf16 mismatch vs reference"

    print("KERNEL_OK")
</pallas_src>

<mosaic_0001>
module attributes {stable_mosaic.version = 11 : i64} {
  func.func @_mlp_kernel(%arg0: i32, %arg1: memref<4x1024xf32, #tpu.memory_space<vmem>>, %arg2: memref<32x4xf32, #tpu.memory_space<vmem>>, %arg3: memref<32x1xf32, #tpu.memory_space<vmem>>, %arg4: memref<32x32xf32, #tpu.memory_space<vmem>>, %arg5: memref<32x1xf32, #tpu.memory_space<vmem>>, %arg6: memref<2x32xf32, #tpu.memory_space<vmem>>, %arg7: memref<2x1xf32, #tpu.memory_space<vmem>>, %arg8: memref<2x1024xf32, #tpu.memory_space<vmem>>) attributes {dimension_semantics = [#tpu.dimension_semantics<parallel>], iteration_bounds = array<i64: 1>, scalar_prefetch = 0 : i64, scratch_operands = 0 : i64, tpu.core_type = #tpu.core_type<tc>, window_params = [{transform_indices = @transform_0, window_bounds = array<i64: 4, 1024>}, {pipeline_mode = #tpu.pipeline_mode<synchronous>, transform_indices = @transform_1, window_bounds = array<i64: 32, 4>}, {pipeline_mode = #tpu.pipeline_mode<synchronous>, transform_indices = @transform_2, window_bounds = array<i64: 32, 1>}, {pipeline_mode = #tpu.pipeline_mode<synchronous>, transform_indices = @transform_3, window_bounds = array<i64: 32, 32>}, {pipeline_mode = #tpu.pipeline_mode<synchronous>, transform_indices = @transform_4, window_bounds = array<i64: 32, 1>}, {pipeline_mode = #tpu.pipeline_mode<synchronous>, transform_indices = @transform_5, window_bounds = array<i64: 2, 32>}, {pipeline_mode = #tpu.pipeline_mode<synchronous>, transform_indices = @transform_6, window_bounds = array<i64: 2, 1>}, {transform_indices = @transform_7, window_bounds = array<i64: 2, 1024>}]} {
    %c0 = arith.constant 0 : index
    %c0_0 = arith.constant 0 : index
    %0 = vector.load %arg1[%c0, %c0_0] : memref<4x1024xf32, #tpu.memory_space<vmem>>, vector<4x1024xf32>
    %c0_1 = arith.constant 0 : index
    %c0_2 = arith.constant 0 : index
    %1 = vector.load %arg2[%c0_1, %c0_2] : memref<32x4xf32, #tpu.memory_space<vmem>>, vector<32x4xf32>
    %c0_3 = arith.constant 0 : index
    %c0_4 = arith.constant 0 : index
    %2 = vector.load %arg3[%c0_3, %c0_4] : memref<32x1xf32, #tpu.memory_space<vmem>>, vector<32x1xf32>
    %cst = arith.constant dense<0.000000e+00> : vector<32x1024xf32>
    %3 = tpu.matmul %1, %0, %cst {dimension_numbers = #tpu.dot_dimension_numbers<[1], [0], [0], [1], [0, 0, 1, 1], [], []>} : vector<32x4xf32>, vector<4x1024xf32>, vector<32x1024xf32> -> vector<32x1024xf32>
    %4 = vector.broadcast %2 : vector<32x1xf32> to vector<32x1024xf32>
    %5 = arith.addf %3, %4 : vector<32x1024xf32>
    %6 = math.tanh %5 : vector<32x1024xf32>
    %c0_5 = arith.constant 0 : index
    %c0_6 = arith.constant 0 : index
    %7 = vector.load %arg4[%c0_5, %c0_6] : memref<32x32xf32, #tpu.memory_space<vmem>>, vector<32x32xf32>
    %c0_7 = arith.constant 0 : index
    %c0_8 = arith.constant 0 : index
    %8 = vector.load %arg5[%c0_7, %c0_8] : memref<32x1xf32, #tpu.memory_space<vmem>>, vector<32x1xf32>
    %cst_9 = arith.constant dense<0.000000e+00> : vector<32x1024xf32>
    %9 = tpu.matmul %7, %6, %cst_9 {dimension_numbers = #tpu.dot_dimension_numbers<[1], [0], [0], [1], [0, 0, 1, 1], [], []>} : vector<32x32xf32>, vector<32x1024xf32>, vector<32x1024xf32> -> vector<32x1024xf32>
    %10 = vector.broadcast %8 : vector<32x1xf32> to vector<32x1024xf32>
    %11 = arith.addf %9, %10 : vector<32x1024xf32>
    %12 = math.tanh %11 : vector<32x1024xf32>
    %c0_10 = arith.constant 0 : index
    %c0_11 = arith.constant 0 : index
    %13 = vector.load %arg6[%c0_10, %c0_11] : memref<2x32xf32, #tpu.memory_space<vmem>>, vector<2x32xf32>
    %c0_12 = arith.constant 0 : index
    %c0_13 = arith.constant 0 : index
    %14 = vector.load %arg7[%c0_12, %c0_13] : memref<2x1xf32, #tpu.memory_space<vmem>>, vector<2x1xf32>
    %cst_14 = arith.constant dense<0.000000e+00> : vector<2x1024xf32>
    %15 = tpu.matmul %13, %12, %cst_14 {dimension_numbers = #tpu.dot_dimension_numbers<[1], [0], [0], [1], [0, 0, 1, 1], [], []>} : vector<2x32xf32>, vector<32x1024xf32>, vector<2x1024xf32> -> vector<2x1024xf32>
    %16 = vector.broadcast %14 : vector<2x1xf32> to vector<2x1024xf32>
    %17 = arith.addf %15, %16 : vector<2x1024xf32>
    %c0_15 = arith.constant 0 : index
    %c0_16 = arith.constant 0 : index
    %18 = vector.load %arg8[%c0_15, %c0_16] : memref<2x1024xf32, #tpu.memory_space<vmem>>, vector<2x1024xf32>
    tpu.vector_store %arg8[%c0_15, %c0_16], %17 {strides = array<i32>} : memref<2x1024xf32, #tpu.memory_space<vmem>>, vector<2x1024xf32>,
    return
  }
  func.func @transform_0(%arg0: i32) -> (i32, i32) {
    %c0_i32 = arith.constant 0 : i32
    %c0_i32_0 = arith.constant 0 : i32
    return %c0_i32, %arg0 : i32, i32
  }
  func.func @transform_1(%arg0: i32) -> (i32, i32) {
    %c0_i32 = arith.constant 0 : i32
    %c0_i32_0 = arith.constant 0 : i32
    %c0_i32_1 = arith.constant 0 : i32
    return %c0_i32, %c0_i32_0 : i32, i32
  }
  func.func @transform_2(%arg0: i32) -> (i32, i32) {
    %c0_i32 = arith.constant 0 : i32
    %c0_i32_0 = arith.constant 0 : i32
    %c0_i32_1 = arith.constant 0 : i32
    return %c0_i32, %c0_i32_0 : i32, i32
  }
  func.func @transform_3(%arg0: i32) -> (i32, i32) {
    %c0_i32 = arith.constant 0 : i32
    %c0_i32_0 = arith.constant 0 : i32
    %c0_i32_1 = arith.constant 0 : i32
    return %c0_i32, %c0_i32_0 : i32, i32
  }
  func.func @transform_4(%arg0: i32) -> (i32, i32) {
    %c0_i32 = arith.constant 0 : i32
    %c0_i32_0 = arith.constant 0 : i32
    %c0_i32_1 = arith.constant 0 : i32
    return %c0_i32, %c0_i32_0 : i32, i32
  }
  func.func @transform_5(%arg0: i32) -> (i32, i32) {
    %c0_i32 = arith.constant 0 : i32
    %c0_i32_0 = arith.constant 0 : i32
    %c0_i32_1 = arith.constant 0 : i32
    return %c0_i32, %c0_i32_0 : i32, i32
  }
  func.func @transform_6(%arg0: i32) -> (i32, i32) {
    %c0_i32 = arith.constant 0 : i32
    %c0_i32_0 = arith.constant 0 : i32
    %c0_i32_1 = arith.constant 0 : i32
    return %c0_i32, %c0_i32_0 : i32, i32
  }
  func.func @transform_7(%arg0: i32) -> (i32, i32) {
    %c0_i32 = arith.constant 0 : i32
    %c0_i32_0 = arith.constant 0 : i32
    return %c0_i32, %arg0 : i32, i32
  }
}

</mosaic_0001>

<bundles_post_ra>
// kernel: tpu_custom_call.1
= control target key start
LH: loop header
LB: loop body
LE: loop exit
PB: predicated region body
PF: predicated region fallthrough
CT: control target
= control target key end

     0   :  { %v1128_v2 = vmov 0   ;;  %s1479_s0 = inlined_call_operand.vmem [shape: f32[4,1024], index: 0, kind: input, shape index: {}]   ;;  %s1480_s1 = inlined_call_operand.vmem [shape: f32[32,4], index: 1, kind: input, shape index: {}]   ;;  %s1481_s2 = inlined_call_operand.vmem [shape: f32[32,1], index: 2, kind: input, shape index: {}]   ;;  %s1482_s3 = inlined_call_operand.vmem [shape: f32[32,32], index: 3, kind: input, shape index: {}]   ;;  %s1483_s4 = inlined_call_operand.vmem [shape: f32[32,1], index: 4, kind: input, shape index: {}]   ;;  %s1484_s5 = inlined_call_operand.vmem [shape: f32[2,32], index: 5, kind: input, shape index: {}]   ;;  %s1485_s6 = inlined_call_operand.vmem [shape: f32[2,1], index: 6, kind: input, shape index: {}]   ;;  %s1486_s7 = inlined_call_operand.hbm [shape: f32[2,1024], index: 7, kind: output, shape index: {}]  }
   0x1   :  { %v27_v0 = vld [vmem:[%s1479_s0] sm:$0xff]  ;;  %v28_v1 = vld [vmem:[%s1479_s0 + $0x8] sm:$0xff]  ;;  %972 = vset.pattern.permute.xlu1 %v1128_v2  ;;  %971 = vset.pattern.permute.xlu0 %v1128_v2  ;;  %v38_v4 = vld [vmem:[%s1481_s2 + $0x18] sm:$0xff] }
   0x2   :  { %63 = vst [vmem:[#allocation1] ss:$2 sm:$0xff] %v27_v0  ;;  %v36_v3 = vld [vmem:[%s1481_s2 + $0x8] sm:$0xff]  ;;  %973 = vset.pattern.permute.xlu2 %v1128_v2  ;;  %56 = vperm.xlu0 %971, %v38_v4   ;;  %v30_v5 = vld [vmem:[%s1479_s0 + $0x18] sm:$0xff]  ;;  %v29_v6 = vld [vmem:[%s1479_s0 + $0x10] sm:$0xff] }
   0x3   :  { %65 = vst [vmem:[#allocation1 + $0x10] ss:$2 sm:$0xff] %v28_v1  ;;  %46 = vperm.xlu1 %972, %v36_v3  }
   0x4   :  { %12 = vsyncpa [#allocation3], 0  ;;  %69 = vst [vmem:[#allocation1 + $0x30] ss:$2 sm:$0xff] %v30_v5  ;;  %vm91_vm0 = vcmask 1043456   ;;  %v31_v7 = vld [vmem:[%s1480_s1] sm:$0xff] }
   0x5   :  { %67 = vst [vmem:[#allocation1 + $0x20] ss:$2 sm:$0xff] %v29_v6  ;;  %vm78_vm1 = vcmask 31744   ;;  %v35_v12 = vld [vmem:[%s1481_s2] sm:$0xff]  ;;  %v37_v13 = vld [vmem:[%s1481_s2 + $0x10] sm:$0xff]  ;;  %v32_v18 = vld [vmem:[%s1480_s1 + $0x8] sm:$0xff] }
   0x6   :  { %v376_v19 = vld [vmem:[%s1483_s4] sm:$0xff]  ;;  %v377_v20 = vld [vmem:[%s1483_s4 + $0x8] sm:$0xff]  ;;  %v33_v21 = vld [vmem:[%s1480_s1 + $0x10] sm:$0xff]  ;;  %vm400_vm2 = vcmask 261120   ;;  %vm861_vm3 = vcmask 1041408   ;;  %vm863_vm4 = vcmask 1045508  }
   0x7   :  { %v34_v22 = vld [vmem:[%s1480_s1 + $0x18] sm:$0xff]  ;;  %s880_s2 = sshll.u32 %s1486_s7, 4  ;;  %s881_s2 = int_to_ptr.hbm [resolvable:$true] %s880_s2 }
   0x9   :  { %v70_v8 = vld.sshfl [vmem:[#allocation1] sm:$0xff pattern:$0x75316420]  ;;  %v71_v9 = vld.sshfl [vmem:[#allocation1 + $0x8] sm:$0xff pattern:$0x75316420] }
   0xa   :  { %889 = vmatpush.msk.msra.mxu0 %vm91_vm0, %v70_v8  ;;  %894 = vmatpush.msk.msra.mxu1 %vm91_vm0, %v71_v9  ;;  %v72_v10 = vld.sshfl [vmem:[#allocation1 + $0x10] sm:$0xff pattern:$0x75316420]  ;;  %v73_v11 = vld.sshfl [vmem:[#allocation1 + $0x18] sm:$0xff pattern:$0x75316420] }
   0xb   :  { %899 = vmatpush.msk.msra.mxu2 %vm91_vm0, %v72_v10  ;;  %904 = vmatpush.msk.msra.mxu3 %vm91_vm0, %v73_v11  ;;  %v76_v14 = vld.sshfl [vmem:[#allocation1 + $0x30] sm:$0xff pattern:$0x75316420]  ;;  %v77_v15 = vld.sshfl [vmem:[#allocation1 + $0x38] sm:$0xff pattern:$0x75316420] }
   0xc   :  { %890 = vmatmul.msk.f32.vlgmr.msra.gmra.mxu0 %vm78_vm1, %v31_v7  ;;  %895 = vmatmul.msk.f32.vlgmr.msra.gmra.mxu1 %vm78_vm1, %v31_v7  ;;  %v74_v16 = vld.sshfl [vmem:[#allocation1 + $0x20] sm:$0xff pattern:$0x75316420]  ;;  %v75_v17 = vld.sshfl [vmem:[#allocation1 + $0x28] sm:$0xff pattern:$0x75316420] }
   0xd   :  { %900 = vmatmul.msk.f32.vlgmr.msra.gmra.mxu2 %vm78_vm1, %v31_v7  ;;  %905 = vmatmul.msk.f32.vlgmr.msra.gmra.mxu3 %vm78_vm1, %v31_v7  ;;  %v1287_v10 = vld [vmem:[%s1482_s3] sm:$0xff] }
   0xe   :  { %41 = vperm.xlu1 %972, %v35_v12   ;;  %919 = vmatpush.msk.msrb.mxu2 %vm91_vm0, %v76_v14 }
   0xf   :  { %924 = vmatpush.msk.msrb.mxu3 %vm91_vm0, %v77_v15  ;;  %909 = vmatpush.msk.msrb.mxu0 %vm91_vm0, %v74_v16 }
  0x10   :  { %914 = vmatpush.msk.msrb.mxu1 %vm91_vm0, %v75_v17  ;;  %51 = vperm.xlu0 %971, %v37_v13  }
  0x14   :  { %891 = vmatmul.msk.f32.gmra.mxu0 %vm78_vm1, %v32_v18  ;;  %896 = vmatmul.msk.f32.gmra.mxu1 %vm78_vm1, %v32_v18 }
  0x15   :  { %901 = vmatmul.msk.f32.gmra.mxu2 %vm78_vm1, %v32_v18  ;;  %906 = vmatmul.msk.f32.gmra.mxu3 %vm78_vm1, %v32_v18 }
  0x16   :  { %382 = vperm.xlu1 %972, %v376_v19  }
  0x18   :  { %387 = vperm.xlu0 %971, %v377_v20  }
  0x1c   :  { %892 = vmatmul.msk.f32.gmra.mxu0 %vm78_vm1, %v33_v21  ;;  %897 = vmatmul.msk.f32.gmra.mxu1 %vm78_vm1, %v33_v21 }
  0x1d   :  { %902 = vmatmul.msk.f32.gmra.mxu2 %vm78_vm1, %v33_v21  ;;  %907 = vmatmul.msk.f32.gmra.mxu3 %vm78_vm1, %v33_v21 }
  0x24   :  { %893 = vmatmul.msk.f32.gmra.mxu0 %vm78_vm1, %v34_v22  ;;  %898 = vmatmul.msk.f32.gmra.mxu1 %vm78_vm1, %v34_v22 }
  0x25   :  { %903 = vmatmul.msk.f32.gmra.mxu2 %vm78_vm1, %v34_v22  ;;  %908 = vmatmul.msk.f32.gmra.mxu3 %vm78_vm1, %v34_v22 }
  0x2c   :  { %910 = vmatmul.msk.f32.vlgmr.msrb.gmra.mxu0 %vm78_vm1, %v31_v7  ;;  %915 = vmatmul.msk.f32.vlgmr.msrb.gmra.mxu1 %vm78_vm1, %v31_v7 }
  0x2d   :  { %920 = vmatmul.msk.f32.vlgmr.msrb.gmra.mxu2 %vm78_vm1, %v31_v7  ;;  %925 = vmatmul.msk.f32.vlgmr.msrb.gmra.mxu3 %vm78_vm1, %v31_v7 }
  0x34   :  { %911 = vmatmul.msk.f32.gmra.mxu0 %vm78_vm1, %v32_v18  ;;  %916 = vmatmul.msk.f32.gmra.mxu1 %vm78_vm1, %v32_v18 }
  0x35   :  { %921 = vmatmul.msk.f32.gmra.mxu2 %vm78_vm1, %v32_v18  ;;  %926 = vmatmul.msk.f32.gmra.mxu3 %vm78_vm1, %v32_v18 }
  0x3c   :  { %912 = vmatmul.msk.f32.gmra.mxu0 %vm78_vm1, %v33_v21  ;;  %917 = vmatmul.msk.f32.gmra.mxu1 %vm78_vm1, %v33_v21 }
  0x3d   :  { %922 = vmatmul.msk.f32.gmra.mxu2 %vm78_vm1, %v33_v21  ;;  %927 = vmatmul.msk.f32.gmra.mxu3 %vm78_vm1, %v33_v21 }
  0x44   :  { %913 = vmatmul.msk.f32.gmra.mxu0 %vm78_vm1, %v34_v22  ;;  %918 = vmatmul.msk.f32.gmra.mxu1 %vm78_vm1, %v34_v22 }
  0x45   :  { %923 = vmatmul.msk.f32.gmra.mxu2 %vm78_vm1, %v34_v22  ;;  %928 = vmatmul.msk.f32.gmra.mxu3 %vm78_vm1, %v34_v22  ;;  %v1296_v22 = vld [vmem:[%s1482_s3 + $0x8] sm:$0xff] }
  0x74   :  { %v1254_v30 = vpop.permute.xlu0 %56 }
  0x75   :  { %v1252_v29 = vpop.permute.xlu1 %46 }
  0x80   :  { %v1256_v35 = vpop.permute.xlu1 %41 }
  0x82   :  { %v1260_v42 = vpop.permute.xlu0 %51 }
  0x89   :  { %v125_v23 = vpop.f32.mrf.mxu0  ;;  %v154_v24 = vpop.f32.mrf.mxu1 }
  0x8a   :  { %v126_v36 = vadd.f32 %v125_v23, %v1256_v35  ;;  %v155_v47 = vadd.f32 %v154_v24, %v1256_v35 }
  0x8c   :  { %974 = vtanh.f32 %v126_v36 }
  0x90   :  { %v183_v25 = vpop.f32.mrf.mxu2  ;;  %v212_v26 = vpop.f32.mrf.mxu3 }
  0x91   :  { %v128_v27 = vpop.f32.mrf.mxu0  ;;  %v157_v28 = vpop.f32.mrf.mxu1  ;;  %v184_v0 = vadd.f32 %v183_v25, %v1256_v35  ;;  %v213_v2 = vadd.f32 %v212_v26, %v1256_v35 }
  0x92   :  { %v129_v37 = vadd.f32 %v128_v27, %v1252_v29  ;;  %v158_v48 = vadd.f32 %v157_v28, %v1252_v29  ;;  %v975_v51 = vpop.eup %974 }
  0x94   :  { %976 = vtanh.f32 %v129_v37 }
  0x98   :  { %v186_v31 = vpop.f32.mrf.mxu2  ;;  %v215_v32 = vpop.f32.mrf.mxu3 }
  0x99   :  { %v131_v33 = vpop.f32.mrf.mxu0  ;;  %v160_v34 = vpop.f32.mrf.mxu1  ;;  %v187_v60 = vadd.f32 %v186_v31, %v1252_v29  ;;  %v216_v62 = vadd.f32 %v215_v32, %v1252_v29  ;;  %v1313_v31 = vld [vmem:[%s1482_s3 + $0x10] sm:$0xff] }
  0x9a   :  { %v132_v45 = vadd.f32 %v131_v33, %v1260_v42  ;;  %v161_v46 = vadd.f32 %v160_v34, %v1260_v42  ;;  %v977_v57 = vpop.eup %976 }
  0xa0   :  { %v189_v38 = vpop.f32.mrf.mxu2  ;;  %v218_v39 = vpop.f32.mrf.mxu3 }
  0xa1   :  { %v134_v40 = vpop.f32.mrf.mxu0  ;;  %v163_v41 = vpop.f32.mrf.mxu1  ;;  %v190_v52 = vadd.f32 %v189_v38, %v1260_v42  ;;  %v219_v58 = vadd.f32 %v218_v39, %v1260_v42  ;;  %v379_v38 = vld [vmem:[%s1483_s4 + $0x18] sm:$0xff] }
  0xa2   :  { %v135_v43 = vadd.f32 %v134_v40, %v1254_v30  ;;  %v164_v44 = vadd.f32 %v163_v41, %v1254_v30  ;;  %397 = vperm.xlu2 %973, %v379_v38  }
  0xa4   :  { %978 = vtanh.f32 %v135_v43 }
  0xa5   :  { %980 = vtanh.f32 %v164_v44 }
  0xa6   :  { %982 = vtanh.f32 %v132_v45 }
  0xa7   :  { %984 = vtanh.f32 %v161_v46  ;;  %v1337_v46 = vld [vmem:[%s1482_s3 + $0x18] sm:$0xff] }
  0xa8   :  { %v192_v49 = vpop.f32.mrf.mxu2  ;;  %v221_v50 = vpop.f32.mrf.mxu3  ;;  %986 = vtanh.f32 %v155_v47 }
  0xa9   :  { %v193_v53 = vadd.f32 %v192_v49, %v1254_v30  ;;  %v222_v54 = vadd.f32 %v221_v50, %v1254_v30  ;;  %v1271_v55 = vpop.f32.mrf.mxu0  ;;  %v1273_v56 = vpop.f32.mrf.mxu1  ;;  %988 = vtanh.f32 %v158_v48 }
  0xaa   :  { %v979_v59 = vpop.eup %978  ;;  %v242_v23 = vadd.f32 %v1271_v55, %v1256_v35  ;;  %v271_v24 = vadd.f32 %v1273_v56, %v1256_v35 }
  0xab   :  { %990 = vtanh.f32 %v193_v53  ;;  %v981_v61 = vpop.eup %980  ;;  %425 = vmatpush.msra.mxu0 %v979_v59 }
  0xac   :  { %992 = vtanh.f32 %v222_v54  ;;  %v983_v63 = vpop.eup %982  ;;  %454 = vmatpush.msra.mxu1 %v981_v61 }
  0xad   :  { %994 = vtanh.f32 %v190_v52  ;;  %v985_v1 = vpop.eup %984  ;;  %426 = vmatpush.msra.mxu0 %v983_v63 }
  0xae   :  { %996 = vtanh.f32 %v219_v58  ;;  %v987_v3 = vpop.eup %986  ;;  %455 = vmatpush.msra.mxu1 %v985_v1 }
  0xaf   :  { %998 = vtanh.f32 %v187_v60  ;;  %v989_v4 = vpop.eup %988  ;;  %427 = vmatpush.msra.mxu0 %v977_v57  ;;  %v678_v60 = vld [vmem:[%s1485_s6] sm:$0x3] }
  0xb0   :  { %1000 = vtanh.f32 %v216_v62  ;;  %v1280_v5 = vpop.f32.mrf.mxu2  ;;  %v1282_v6 = vpop.f32.mrf.mxu3  ;;  %456 = vmatpush.msra.mxu1 %v989_v4 }
  0xb1   :  { %v991_v7 = vpop.eup %990  ;;  %1002 = vtanh.f32 %v184_v0  ;;  %v244_v8 = vpop.f32.mrf.mxu0  ;;  %428 = vmatpush.msra.mxu0 %v975_v51  ;;  %v300_v55 = vadd.f32 %v1280_v5, %v1256_v35  ;;  %v329_v57 = vadd.f32 %v1282_v6, %v1256_v35 }
  0xb2   :  { %v273_v9 = vpop.f32.mrf.mxu1  ;;  %v993_v11 = vpop.eup %992  ;;  %1004 = vtanh.f32 %v213_v2  ;;  %483 = vmatpush.msra.mxu2 %v991_v7  ;;  %457 = vmatpush.msra.mxu1 %v987_v3  ;;  %v245_v37 = vadd.f32 %v244_v8, %v1252_v29 }
  0xb3   :  { %v995_v12 = vpop.eup %994  ;;  %512 = vmatpush.msra.mxu3 %v993_v11  ;;  %929 = vmatmul.msk.f32.vlgmr.msra.gmra.mxu0 %vm400_vm2, %v1287_v10  ;;  %1006 = vtanh.f32 %v242_v23  ;;  %v274_v39 = vadd.f32 %v273_v9, %v1252_v29 }
  0xb4   :  { %v997_v13 = vpop.eup %996  ;;  %933 = vmatmul.msk.f32.vlgmr.msra.gmra.mxu1 %vm400_vm2, %v1287_v10  ;;  %484 = vmatpush.msra.mxu2 %v995_v12  ;;  %1008 = vtanh.f32 %v271_v24 }
  0xb5   :  { %v999_v14 = vpop.eup %998  ;;  %513 = vmatpush.msra.mxu3 %v997_v13 }
  0xb6   :  { %v1001_v15 = vpop.eup %1000  ;;  %485 = vmatpush.msra.mxu2 %v999_v14 }
  0xb7   :  { %v1003_v16 = vpop.eup %1002  ;;  %514 = vmatpush.msra.mxu3 %v1001_v15 }
  0xb8   :  { %v1005_v17 = vpop.eup %1004  ;;  %v302_v18 = vpop.f32.mrf.mxu2  ;;  %486 = vmatpush.msra.mxu2 %v1003_v16 }
  0xb9   :  { %v331_v19 = vpop.f32.mrf.mxu3  ;;  %515 = vmatpush.msra.mxu3 %v1005_v17  ;;  %v247_v20 = vpop.f32.mrf.mxu0  ;;  %937 = vmatmul.msk.f32.vlgmr.msra.gmra.mxu2 %vm400_vm2, %v1287_v10  ;;  %v303_v51 = vadd.f32 %v302_v18, %v1252_v29 }
  0xba   :  { %v276_v21 = vpop.f32.mrf.mxu1  ;;  %941 = vmatmul.msk.f32.vlgmr.msra.gmra.mxu3 %vm400_vm2, %v1287_v10  ;;  %v248_v34 = vadd.f32 %v247_v20, %v1260_v42  ;;  %v1007_v43 = vpop.eup %1006  ;;  %v332_v53 = vadd.f32 %v331_v19, %v1252_v29 }
  0xbb   :  { %930 = vmatmul.msk.f32.gmra.mxu0 %vm400_vm2, %v1296_v22  ;;  %v277_v36 = vadd.f32 %v276_v21, %v1260_v42  ;;  %v1009_v47 = vpop.eup %1008  ;;  %v1405_v20 = vpop.permute.xlu0 %387 }
  0xbc   :  { %934 = vmatmul.msk.f32.gmra.mxu1 %vm400_vm2, %v1296_v22  ;;  %v1407_v21 = vpop.permute.xlu1 %382 }
  0xc0   :  { %v305_v25 = vpop.f32.mrf.mxu2 }
  0xc1   :  { %v334_v26 = vpop.f32.mrf.mxu3  ;;  %v250_v27 = vpop.f32.mrf.mxu0  ;;  %938 = vmatmul.msk.f32.gmra.mxu2 %vm400_vm2, %v1296_v22  ;;  %v306_v48 = vadd.f32 %v305_v25, %v1260_v42 }
  0xc2   :  { %v279_v28 = vpop.f32.mrf.mxu1  ;;  %942 = vmatmul.msk.f32.gmra.mxu3 %vm400_vm2, %v1296_v22  ;;  %v251_v32 = vadd.f32 %v250_v27, %v1254_v30  ;;  %v335_v50 = vadd.f32 %v334_v26, %v1260_v42  ;;  %v378_v42 = vld [vmem:[%s1483_s4 + $0x10] sm:$0xff] }
  0xc3   :  { %v280_v33 = vadd.f32 %v279_v28, %v1254_v30  ;;  %931 = vmatmul.msk.f32.gmra.mxu0 %vm400_vm2, %v1313_v31  ;;  %392 = vperm.xlu2 %973, %v378_v42  }
  0xc4   :  { %935 = vmatmul.msk.f32.gmra.mxu1 %vm400_vm2, %v1313_v31  ;;  %1010 = vtanh.f32 %v251_v32 }
  0xc5   :  { %1012 = vtanh.f32 %v280_v33 }
  0xc6   :  { %1014 = vtanh.f32 %v248_v34 }
  0xc7   :  { %1016 = vtanh.f32 %v277_v36 }
  0xc8   :  { %v308_v40 = vpop.f32.mrf.mxu2  ;;  %1018 = vtanh.f32 %v245_v37 }
  0xc9   :  { %v337_v41 = vpop.f32.mrf.mxu3  ;;  %v309_v44 = vadd.f32 %v308_v40, %v1254_v30  ;;  %1020 = vtanh.f32 %v274_v39  ;;  %939 = vmatmul.msk.f32.gmra.mxu2 %vm400_vm2, %v1313_v31 }
  0xca   :  { %v338_v45 = vadd.f32 %v337_v41, %v1254_v30  ;;  %943 = vmatmul.msk.f32.gmra.mxu3 %vm400_vm2, %v1313_v31  ;;  %v1011_v49 = vpop.eup %1010 }
  0xcb   :  { %1022 = vtanh.f32 %v309_v44  ;;  %v1013_v30 = vpop.eup %1012  ;;  %932 = vmatmul.msk.f32.gmra.mxu0 %vm400_vm2, %v1337_v46  ;;  %681 = vperm.xlu2 %973, %v678_v60  }
  0xcc   :  { %1024 = vtanh.f32 %v338_v45  ;;  %936 = vmatmul.msk.f32.gmra.mxu1 %vm400_vm2, %v1337_v46  ;;  %v1015_v52 = vpop.eup %1014  ;;  %541 = vmatpush.msrb.mxu0 %v1011_v49 }
  0xcd   :  { %570 = vmatpush.msrb.mxu1 %v1013_v30  ;;  %v1017_v54 = vpop.eup %1016  ;;  %1026 = vtanh.f32 %v306_v48 }
  0xce   :  { %v1019_v56 = vpop.eup %1018  ;;  %1028 = vtanh.f32 %v335_v50  ;;  %542 = vmatpush.msrb.mxu0 %v1015_v52 }
  0xcf   :  { %571 = vmatpush.msrb.mxu1 %v1017_v54  ;;  %v1021_v29 = vpop.eup %1020  ;;  %1030 = vtanh.f32 %v303_v51 }
  0xd0   :  { %1032 = vtanh.f32 %v332_v53  ;;  %543 = vmatpush.msrb.mxu0 %v1019_v56 }
  0xd1   :  { %v1023_v58 = vpop.eup %1022  ;;  %572 = vmatpush.msrb.mxu1 %v1021_v29  ;;  %1034 = vtanh.f32 %v300_v55  ;;  %940 = vmatmul.msk.f32.gmra.mxu2 %vm400_vm2, %v1337_v46 }
  0xd2   :  { %v1025_v59 = vpop.eup %1024  ;;  %944 = vmatmul.msk.f32.gmra.mxu3 %vm400_vm2, %v1337_v46  ;;  %1036 = vtanh.f32 %v329_v57  ;;  %544 = vmatpush.msrb.mxu0 %v1007_v43 }
  0xd3   :  { %573 = vmatpush.msrb.mxu1 %v1009_v47  ;;  %v1027_v35 = vpop.eup %1026  ;;  %599 = vmatpush.msrb.mxu2 %v1023_v58 }
  0xd4   :  { %628 = vmatpush.msrb.mxu3 %v1025_v59  ;;  %v1029_v61 = vpop.eup %1028  ;;  %945 = vmatmul.msk.f32.vlgmr.msrb.gmra.mxu0 %vm400_vm2, %v1287_v10 }
  0xd5   :  { %949 = vmatmul.msk.f32.vlgmr.msrb.gmra.mxu1 %vm400_vm2, %v1287_v10  ;;  %v1031_v62 = vpop.eup %1030  ;;  %600 = vmatpush.msrb.mxu2 %v1027_v35 }
  0xd6   :  { %629 = vmatpush.msrb.mxu3 %v1029_v61  ;;  %v1033_v63 = vpop.eup %1032 }
  0xd7   :  { %v1035_v0 = vpop.eup %1034  ;;  %601 = vmatpush.msrb.mxu2 %v1031_v62 }
  0xd8   :  { %630 = vmatpush.msrb.mxu3 %v1033_v63  ;;  %v1037_v1 = vpop.eup %1036 }
  0xd9   :  { %602 = vmatpush.msrb.mxu2 %v1035_v0 }
  0xda   :  { %631 = vmatpush.msrb.mxu3 %v1037_v1  ;;  %953 = vmatmul.msk.f32.vlgmr.msrb.gmra.mxu2 %vm400_vm2, %v1287_v10 }
  0xdb   :  { %957 = vmatmul.msk.f32.vlgmr.msrb.gmra.mxu3 %vm400_vm2, %v1287_v10 }
  0xdc   :  { %946 = vmatmul.msk.f32.gmra.mxu0 %vm400_vm2, %v1296_v22 }
  0xdd   :  { %950 = vmatmul.msk.f32.gmra.mxu1 %vm400_vm2, %v1296_v22 }
  0xe2   :  { %954 = vmatmul.msk.f32.gmra.mxu2 %vm400_vm2, %v1296_v22 }
  0xe3   :  { %958 = vmatmul.msk.f32.gmra.mxu3 %vm400_vm2, %v1296_v22 }
  0xe4   :  { %947 = vmatmul.msk.f32.gmra.mxu0 %vm400_vm2, %v1313_v31 }
  0xe5   :  { %951 = vmatmul.msk.f32.gmra.mxu1 %vm400_vm2, %v1313_v31 }
  0xea   :  { %955 = vmatmul.msk.f32.gmra.mxu2 %vm400_vm2, %v1313_v31 }
  0xeb   :  { %959 = vmatmul.msk.f32.gmra.mxu3 %vm400_vm2, %v1313_v31 }
  0xec   :  { %948 = vmatmul.msk.f32.gmra.mxu0 %vm400_vm2, %v1337_v46 }
  0xed   :  { %952 = vmatmul.msk.f32.gmra.mxu1 %vm400_vm2, %v1337_v46 }
  0xf2   :  { %956 = vmatmul.msk.f32.gmra.mxu2 %vm400_vm2, %v1337_v46 }
  0xf3   :  { %960 = vmatmul.msk.f32.gmra.mxu3 %vm400_vm2, %v1337_v46  ;;  %v1424_v46 = vld [vmem:[%s1484_s5] sm:$0x3]  ;;  %s1129_s5 = smov [#allocation2]  }
  0xf4   :  { %s878_s15 = sshll.u32 %s1129_s5, 4  ;;  %s879_s15 = int_to_ptr.vmem [resolvable:$true] %s878_s15 }
  0xfc   :  { %v1397_v4 = vpop.permute.xlu2 %397 }
 0x11d   :  { %v1399_v11 = vpop.permute.xlu2 %392 }
 0x130   :  { %v430_v2 = vpop.f32.mrf.mxu0 }
 0x131   :  { %v459_v3 = vpop.f32.mrf.mxu1  ;;  %v431_v26 = vadd.f32 %v430_v2, %v1407_v21 }
 0x132   :  { %v460_v27 = vadd.f32 %v459_v3, %v1407_v21 }
 0x138   :  { %v433_v5 = vpop.f32.mrf.mxu0 }
 0x139   :  { %v462_v6 = vpop.f32.mrf.mxu1  ;;  %v434_v22 = vadd.f32 %v433_v5, %v1405_v20 }
 0x13a   :  { %v463_v23 = vadd.f32 %v462_v6, %v1405_v20 }
 0x13c   :  { %v488_v7 = vpop.f32.mrf.mxu2 }
 0x13d   :  { %v517_v8 = vpop.f32.mrf.mxu3  ;;  %v489_v30 = vadd.f32 %v488_v7, %v1407_v21 }
 0x13e   :  { %v518_v53 = vadd.f32 %v517_v8, %v1407_v21 }
 0x140   :  { %v436_v9 = vpop.f32.mrf.mxu0 }
 0x141   :  { %v465_v10 = vpop.f32.mrf.mxu1  ;;  %v437_v14 = vadd.f32 %v436_v9, %v1399_v11 }
 0x142   :  { %v466_v15 = vadd.f32 %v465_v10, %v1399_v11 }
 0x143   :  { %1038 = vtanh.f32 %v437_v14 }
 0x144   :  { %v491_v12 = vpop.f32.mrf.mxu2  ;;  %1040 = vtanh.f32 %v466_v15 }
 0x145   :  { %v520_v13 = vpop.f32.mrf.mxu3  ;;  %v492_v48 = vadd.f32 %v491_v12, %v1405_v20 }
 0x146   :  { %v521_v50 = vadd.f32 %v520_v13, %v1405_v20 }
 0x148   :  { %v439_v16 = vpop.f32.mrf.mxu0 }
 0x149   :  { %v468_v17 = vpop.f32.mrf.mxu1  ;;  %v440_v18 = vadd.f32 %v439_v16, %v1397_v4  ;;  %v1039_v28 = vpop.eup %1038 }
 0x14a   :  { %v469_v19 = vadd.f32 %v468_v17, %v1397_v4  ;;  %v1041_v31 = vpop.eup %1040 }
 0x14b   :  { %1042 = vtanh.f32 %v440_v18 }
 0x14c   :  { %1044 = vtanh.f32 %v469_v19  ;;  %v494_v24 = vpop.f32.mrf.mxu2 }
 0x14d   :  { %v523_v25 = vpop.f32.mrf.mxu3  ;;  %1046 = vtanh.f32 %v434_v22  ;;  %v495_v40 = vadd.f32 %v494_v24, %v1399_v11 }
 0x14e   :  { %1048 = vtanh.f32 %v463_v23  ;;  %v524_v45 = vadd.f32 %v523_v25, %v1399_v11 }
 0x14f   :  { %1050 = vtanh.f32 %v431_v26 }
 0x150   :  { %1052 = vtanh.f32 %v460_v27 }
 0x151   :  { %v1043_v32 = vpop.eup %1042  ;;  %v1413_v33 = vpop.f32.mrf.mxu0 }
 0x152   :  { %v1415_v34 = vpop.f32.mrf.mxu1  ;;  %v1045_v36 = vpop.eup %1044  ;;  %699 = vmatpush.msra.mxu0 %v1043_v32  ;;  %v547_v13 = vadd.f32 %v1413_v33, %v1407_v21 }
 0x153   :  { %719 = vmatpush.msra.mxu1 %v1045_v36  ;;  %v1047_v39 = vpop.eup %1046  ;;  %v576_v14 = vadd.f32 %v1415_v34, %v1407_v21 }
 0x154   :  { %v497_v37 = vpop.f32.mrf.mxu2  ;;  %700 = vmatpush.msra.mxu0 %v1039_v28  ;;  %v1049_v44 = vpop.eup %1048 }
 0x155   :  { %v526_v38 = vpop.f32.mrf.mxu3  ;;  %v498_v41 = vadd.f32 %v497_v37, %v1397_v4  ;;  %720 = vmatpush.msra.mxu1 %v1041_v31  ;;  %v1051_v47 = vpop.eup %1050 }
 0x156   :  { %v527_v43 = vadd.f32 %v526_v38, %v1397_v4  ;;  %701 = vmatpush.msra.mxu0 %v1047_v39  ;;  %v1053_v49 = vpop.eup %1052 }
 0x157   :  { %1054 = vtanh.f32 %v498_v41  ;;  %721 = vmatpush.msra.mxu1 %v1049_v44  ;;  %v682_v44 = vpop.permute.xlu2 %681 }
 0x158   :  { %1056 = vtanh.f32 %v527_v43  ;;  %702 = vmatpush.msra.mxu0 %v1051_v47 }
 0x159   :  { %1058 = vtanh.f32 %v495_v40  ;;  %v549_v51 = vpop.f32.mrf.mxu0  ;;  %722 = vmatpush.msra.mxu1 %v1053_v49  ;;  %961 = vmatmul.msk.f32.vlgmr.msra.gmra.mxu0 %vm400_vm2, %v1424_v46 }
 0x15a   :  { %v578_v52 = vpop.f32.mrf.mxu1  ;;  %1060 = vtanh.f32 %v524_v45  ;;  %962 = vmatmul.msk.f32.vlgmr.msra.gmra.mxu1 %vm400_vm2, %v1424_v46  ;;  %v550_v8 = vadd.f32 %v549_v51, %v1405_v20 }
 0x15b   :  { %1062 = vtanh.f32 %v492_v48  ;;  %v579_v9 = vadd.f32 %v578_v52, %v1405_v20 }
 0x15c   :  { %1064 = vtanh.f32 %v521_v50 }
 0x15d   :  { %v1055_v42 = vpop.eup %1054  ;;  %1066 = vtanh.f32 %v489_v30  ;;  %v1434_v54 = vpop.f32.mrf.mxu2 }
 0x15e   :  { %v1436_v55 = vpop.f32.mrf.mxu3  ;;  %v1057_v56 = vpop.eup %1056  ;;  %1068 = vtanh.f32 %v518_v53  ;;  %739 = vmatpush.msra.mxu2 %v1055_v42  ;;  %v605_v36 = vadd.f32 %v1434_v54, %v1407_v21 }
 0x15f   :  { %v1059_v57 = vpop.eup %1058  ;;  %759 = vmatpush.msra.mxu3 %v1057_v56 }
 0x160   :  { %v1061_v29 = vpop.eup %1060  ;;  %740 = vmatpush.msra.mxu2 %v1059_v57 }
 0x161   :  { %v1063_v58 = vpop.eup %1062  ;;  %v552_v59 = vpop.f32.mrf.mxu0  ;;  %760 = vmatpush.msra.mxu3 %v1061_v29 }
 0x162   :  { %v581_v35 = vpop.f32.mrf.mxu1  ;;  %v1065_v60 = vpop.eup %1064  ;;  %741 = vmatpush.msra.mxu2 %v1063_v58  ;;  %v553_v3 = vadd.f32 %v552_v59, %v1399_v11 }
 0x163   :  { %v1067_v61 = vpop.eup %1066  ;;  %761 = vmatpush.msra.mxu3 %v1065_v60  ;;  %v582_v7 = vadd.f32 %v581_v35, %v1399_v11 }
 0x164   :  { %v1069_v62 = vpop.eup %1068  ;;  %742 = vmatpush.msra.mxu2 %v1067_v61 }
 0x165   :  { %v607_v63 = vpop.f32.mrf.mxu2  ;;  %762 = vmatpush.msra.mxu3 %v1069_v62  ;;  %963 = vmatmul.msk.f32.vlgmr.msra.gmra.mxu2 %vm400_vm2, %v1424_v46 }
 0x166   :  { %v636_v0 = vpop.f32.mrf.mxu3  ;;  %964 = vmatmul.msk.f32.vlgmr.msra.gmra.mxu3 %vm400_vm2, %v1424_v46  ;;  %v608_v32 = vadd.f32 %v607_v63, %v1405_v20 }
 0x167   :  { %v637_v34 = vadd.f32 %v636_v0, %v1405_v20 }
 0x169   :  { %v555_v1 = vpop.f32.mrf.mxu0 }
 0x16a   :  { %v584_v2 = vpop.f32.mrf.mxu1  ;;  %v556_v5 = vadd.f32 %v555_v1, %v1397_v4 }
 0x16b   :  { %v585_v6 = vadd.f32 %v584_v2, %v1397_v4 }
 0x16c   :  { %1070 = vtanh.f32 %v556_v5 }
 0x16d   :  { %1072 = vtanh.f32 %v585_v6  ;;  %v610_v10 = vpop.f32.mrf.mxu2 }
 0x16e   :  { %v639_v12 = vpop.f32.mrf.mxu3  ;;  %1074 = vtanh.f32 %v553_v3  ;;  %v611_v24 = vadd.f32 %v610_v10, %v1399_v11 }
 0x16f   :  { %1076 = vtanh.f32 %v582_v7  ;;  %v640_v28 = vadd.f32 %v639_v12, %v1399_v11 }
 0x170   :  { %1078 = vtanh.f32 %v550_v8 }
 0x171   :  { %1080 = vtanh.f32 %v579_v9 }
 0x172   :  { %v1071_v15 = vpop.eup %1070  ;;  %1082 = vtanh.f32 %v547_v13 }
 0x173   :  { %v1073_v16 = vpop.eup %1072  ;;  %1084 = vtanh.f32 %v576_v14  ;;  %779 = vmatpush.msrb.mxu0 %v1071_v15 }
 0x174   :  { %v1075_v17 = vpop.eup %1074  ;;  %799 = vmatpush.msrb.mxu1 %v1073_v16 }
 0x175   :  { %v1077_v18 = vpop.eup %1076  ;;  %v613_v19 = vpop.f32.mrf.mxu2  ;;  %780 = vmatpush.msrb.mxu0 %v1075_v17 }
 0x176   :  { %v642_v22 = vpop.f32.mrf.mxu3  ;;  %v1079_v23 = vpop.eup %1078  ;;  %v614_v25 = vadd.f32 %v613_v19, %v1397_v4  ;;  %800 = vmatpush.msrb.mxu1 %v1077_v18 }
 0x177   :  { %v643_v26 = vadd.f32 %v642_v22, %v1397_v4  ;;  %v1081_v27 = vpop.eup %1080  ;;  %781 = vmatpush.msrb.mxu0 %v1079_v23  ;;  %v634_v4 = vadd.f32 %v1436_v55, %v1407_v21 }
 0x178   :  { %v1083_v31 = vpop.eup %1082  ;;  %1086 = vtanh.f32 %v614_v25  ;;  %801 = vmatpush.msrb.mxu1 %v1081_v27 }
 0x179   :  { %v1085_v33 = vpop.eup %1084  ;;  %1088 = vtanh.f32 %v643_v26  ;;  %782 = vmatpush.msrb.mxu0 %v1083_v31 }
 0x17a   :  { %1090 = vtanh.f32 %v611_v24  ;;  %802 = vmatpush.msrb.mxu1 %v1085_v33  ;;  %965 = vmatmul.msk.f32.vlgmr.msrb.gmra.mxu0 %vm400_vm2, %v1424_v46 }
 0x17b   :  { %1092 = vtanh.f32 %v640_v28  ;;  %966 = vmatmul.msk.f32.vlgmr.msrb.gmra.mxu1 %vm400_vm2, %v1424_v46 }
 0x17c   :  { %1094 = vtanh.f32 %v608_v32 }
 0x17d   :  { %1096 = vtanh.f32 %v637_v34 }
 0x17e   :  { %v1087_v11 = vpop.eup %1086  ;;  %1098 = vtanh.f32 %v605_v36 }
 0x17f   :  { %v1089_v20 = vpop.eup %1088  ;;  %1100 = vtanh.f32 %v634_v4  ;;  %819 = vmatpush.msrb.mxu2 %v1087_v11 }
 0x180   :  { %v1091_v37 = vpop.eup %1090  ;;  %839 = vmatpush.msrb.mxu3 %v1089_v20 }
 0x181   :  { %v1093_v38 = vpop.eup %1092  ;;  %820 = vmatpush.msrb.mxu2 %v1091_v37 }
 0x182   :  { %v1095_v39 = vpop.eup %1094  ;;  %840 = vmatpush.msrb.mxu3 %v1093_v38 }
 0x183   :  { %v1097_v40 = vpop.eup %1096  ;;  %821 = vmatpush.msrb.mxu2 %v1095_v39 }
 0x184   :  { %v1099_v21 = vpop.eup %1098  ;;  %841 = vmatpush.msrb.mxu3 %v1097_v40 }
 0x185   :  { %v1101_v41 = vpop.eup %1100  ;;  %822 = vmatpush.msrb.mxu2 %v1099_v21 }
 0x186   :  { %842 = vmatpush.msrb.mxu3 %v1101_v41  ;;  %967 = vmatmul.msk.f32.vlgmr.msrb.gmra.mxu2 %vm400_vm2, %v1424_v46 }
 0x187   :  { %968 = vmatmul.msk.f32.vlgmr.msrb.gmra.mxu3 %vm400_vm2, %v1424_v46 }
 0x1d6   :  { %v704_v48 = vpop.f32.mrf.mxu0 }
 0x1d7   :  { %v724_v43 = vpop.f32.mrf.mxu1  ;;  %v705_v53 = vadd.f32 %v704_v48, %v682_v44 }
 0x1d8   :  { %v725_v45 = vadd.f32 %v724_v43, %v682_v44 }
 0x1da   :  { %v855_v30 = vrot.slane %v725_v45, 6 }
 0x1dc   :  { %v862_v54 = vsel %vm861_vm3, %v705_v53, %v855_v30 }
 0x1e8   :  { %v744_v47 = vpop.f32.mrf.mxu2 }
 0x1e9   :  { %v745_v49 = vadd.f32 %v744_v47, %v682_v44  ;;  %v764_v50 = vpop.f32.mrf.mxu3 }
 0x1ea   :  { %v765_v51 = vadd.f32 %v764_v50, %v682_v44 }
 0x1eb   :  { %v856_v52 = vrot.slane %v745_v49, 4 }
 0x1ec   :  { %v857_v42 = vrot.slane %v765_v51, 2 }
 0x1ee   :  { %v864_v55 = vsel %vm863_vm4, %v856_v52, %v857_v42 }
 0x1ef   :  { %v865_v46 = vsel %vm91_vm0, %v862_v54, %v864_v55 }
 0x1f0   :  { %871 = vst [vmem:[#allocation2] sm:$0xff] %v865_v46 }
 0x1f7   :  { %v784_v58 = vpop.f32.mrf.mxu0 }
 0x1f8   :  { %v804_v56 = vpop.f32.mrf.mxu1  ;;  %v785_v63 = vadd.f32 %v784_v58, %v682_v44 }
 0x1f9   :  { %v805_v57 = vadd.f32 %v804_v56, %v682_v44 }
 0x1fb   :  { %v858_v60 = vrot.slane %v805_v57, 6 }
 0x1fd   :  { %v866_v1 = vsel %vm861_vm3, %v785_v63, %v858_v60 }
 0x209   :  { %v824_v29 = vpop.f32.mrf.mxu2 }
 0x20a   :  { %v825_v59 = vadd.f32 %v824_v29, %v682_v44  ;;  %v844_v35 = vpop.f32.mrf.mxu3 }
 0x20b   :  { %v845_v61 = vadd.f32 %v844_v35, %v682_v44 }
 0x20c   :  { %v859_v62 = vrot.slane %v825_v59, 4 }
 0x20d   :  { %v860_v0 = vrot.slane %v845_v61, 2 }
 0x20f   :  { %v867_v2 = vsel %vm863_vm4, %v859_v62, %v860_v0 }
 0x210   :  { %v868_v3 = vsel %vm91_vm0, %v866_v1, %v867_v2 }
 0x211   :  { %872 = vst [vmem:[#allocation2 + $0x8] sm:$0xff] %v868_v3 }
 0x212   :  { %883 = dma.vmem_to_hbm [thread:$0]  %s879_s15, 256, %s881_s2, [#allocation3]  }
 0x213   :  { %1126 = dma.done.wait [#allocation3], 256  }
 0x214   :  { %1127 = vsyncadd [#allocation3], 4294967040 }
 0x215   :  { %888 = vsyncpa [#allocation3], 1 }

</bundles_post_ra>
